<compile_context>
chip_gen: v7x
topology: tpu7x:2x2x1
jax: 0.10.0
libtpu: 0.0.40
codegen_flags: <defaults>
</compile_context>

<pallas_src>
import functools

import jax
import jax.numpy as jnp
from jax import lax
from jax.experimental import pallas as pl
from jax.experimental.pallas import tpu as pltpu


def _matmul_kernel(a_ref, b_ref, o_ref, acc_ref):
    """One (i, j, k) step of a tiled matmul: acc += a[i, k] @ b[k, j]."""
    k = pl.program_id(2)
    nk = pl.num_programs(2)

    @pl.when(k == 0)
    def _init():
        acc_ref[...] = jnp.zeros_like(acc_ref)

    acc_ref[...] += jnp.dot(
        a_ref[...], b_ref[...], preferred_element_type=jnp.float32
    )

    @pl.when(k == nk - 1)
    def _store():
        o_ref[...] = acc_ref[...].astype(o_ref.dtype)


def _cycle_l1_kernel(x12_ref, w_ref, part_ref, acc_ref, *, tm, tn, n_valid):
    """acc += x12[i,k] @ W[k,j]; on last k emit sum(|acc - I|) for the tile."""
    # NOTE: program_id/num_programs are read OUTSIDE any pl.when branch and
    # closed over below (required for correct lowering).
    i = pl.program_id(0)
    j = pl.program_id(1)
    k = pl.program_id(2)
    nk = pl.num_programs(2)
    row0 = i * tm
    col0 = j * tn

    @pl.when(k == 0)
    def _init():
        acc_ref[...] = jnp.zeros_like(acc_ref)

    acc_ref[...] += jnp.dot(
        x12_ref[...], w_ref[...], preferred_element_type=jnp.float32
    )

    @pl.when(k == nk - 1)
    def _finalize():
        cyc = acc_ref[...]
        rows = lax.broadcasted_iota(jnp.int32, cyc.shape, 0) + row0
        cols = lax.broadcasted_iota(jnp.int32, cyc.shape, 1) + col0
        # Fold the identity in without materializing it.  Rows/cols >= n_valid
        # are zero padding (cycle is exactly 0 there), so masking the diagonal
        # to rows < n_valid keeps the padded L1 sum exact.
        on_diag = (rows == cols) & (rows < n_valid)
        diff = jnp.where(on_diag, cyc - 1.0, cyc)
        part = jnp.sum(jnp.abs(diff))  # L1 *sum* for this (tm, tn) tile
        part_ref[...] = jnp.full(part_ref.shape, part, dtype=part_ref.dtype)


def _pick_tile(dim: int, prefs) -> int:
    """Largest preferred tile that divides `dim` (dim is a multiple of 128)."""
    for p in prefs:
        if dim % p == 0:
            return p
    return dim  # unreachable once dim is a multiple of 128


def _pad_square(x: jax.Array, mult: int) -> jax.Array:
    n = x.shape[0]
    n_pad = ((n + mult - 1) // mult) * mult
    if n_pad == n:
        return x
    return jnp.pad(x, ((0, n_pad - n), (0, n_pad - n)))


def _vmem_cap_bytes() -> int:
    """Per-generation VMEM request cap (leave Mosaic scratch headroom)."""
    try:
        kind = jax.devices()[0].device_kind.lower()
    except Exception:  # pragma: no cover - device query best-effort only
        kind = ""
    if "v5" in kind or "v6" in kind:
        return 100 << 20  # 128 MiB physical on v5e/v6e
    return 48 << 20       # v7x: 64 MiB per TensorCore


def _tiled_matmul(a, b, *, tm, tn, tk, vmem_limit):
    m, kdim = a.shape
    _, n = b.shape
    grid = (m // tm, n // tn, kdim // tk)
    bytes_accessed = (grid[1] * m * kdim + grid[0] * kdim * n + m * n) * 4
    return pl.pallas_call(
        _matmul_kernel,
        out_shape=jax.ShapeDtypeStruct((m, n), jnp.float32),
        grid_spec=pltpu.PrefetchScalarGridSpec(
            num_scalar_prefetch=0,
            grid=grid,
            in_specs=[
                pl.BlockSpec((tm, tk), lambda i, j, k: (i, k)),
                pl.BlockSpec((tk, tn), lambda i, j, k: (k, j)),
            ],
            out_specs=pl.BlockSpec((tm, tn), lambda i, j, k: (i, j)),
            scratch_shapes=[pltpu.VMEM((tm, tn), jnp.float32)],
        ),
        compiler_params=pltpu.CompilerParams(
            dimension_semantics=("parallel", "parallel", "arbitrary"),
            vmem_limit_bytes=vmem_limit,
        ),
        cost_estimate=pl.CostEstimate(
            flops=2 * m * n * kdim,
            bytes_accessed=bytes_accessed,
            transcendentals=0,
        ),
    )(a, b)


def _cycle_l1_partials(x12, w, *, n_valid, tm, tn, tk, vmem_limit):
    n_pad = x12.shape[0]
    grid = (n_pad // tm, n_pad // tn, n_pad // tk)
    kernel = functools.partial(_cycle_l1_kernel, tm=tm, tn=tn, n_valid=n_valid)
    bytes_accessed = (
        grid[1] * n_pad * n_pad        # x12 re-read once per j stripe
        + grid[0] * n_pad * n_pad      # W re-read once per i stripe
        + grid[0] * grid[1] * 8 * 128  # lane-dense partial-sum output
    ) * 4
    return pl.pallas_call(
        kernel,
        out_shape=jax.ShapeDtypeStruct((grid[0], grid[1], 8, 128), jnp.float32),
        grid_spec=pltpu.PrefetchScalarGridSpec(
            num_scalar_prefetch=0,
            grid=grid,
            in_specs=[
                pl.BlockSpec((tm, tk), lambda i, j, k: (i, k)),
                pl.BlockSpec((tk, tn), lambda i, j, k: (k, j)),
            ],
            out_specs=pl.BlockSpec((1, 1, 8, 128), lambda i, j, k: (i, j, 0, 0)),
            scratch_shapes=[pltpu.VMEM((tm, tn), jnp.float32)],
        ),
        compiler_params=pltpu.CompilerParams(
            dimension_semantics=("parallel", "parallel", "arbitrary"),
            vmem_limit_bytes=vmem_limit,
        ),
        cost_estimate=pl.CostEstimate(
            flops=2 * n_pad**3,
            bytes_accessed=bytes_accessed,
            transcendentals=0,
        ),
    )(x12, w)


def cycle_loss(x12: jax.Array, x23: jax.Array, x31: jax.Array) -> jax.Array:
    """mean(|x12 @ x23 @ x31 - I|), matching nn.L1Loss(reduction='mean')."""
    assert x12.shape == x23.shape == x31.shape
    assert x12.ndim == 2 and x12.shape[0] == x12.shape[1]
    n = x12.shape[0]

    f32 = jnp.float32
    x12 = _pad_square(x12.astype(f32), 128)
    x23 = _pad_square(x23.astype(f32), 128)
    x31 = _pad_square(x31.astype(f32), 128)
    n_pad = x12.shape[0]

    # Tiles never drop below 128 (padding made n_pad a multiple of 128).
    # Keep >= 2 row tiles when possible so the 'parallel' i axis can actually
    # split across the two v7x TensorCores.
    tm = _pick_tile(n_pad, (256, 128)) if n_pad >= 512 else 128
    tn = _pick_tile(n_pad, (256, 128))
    tk = _pick_tile(n_pad, (512, 256, 128))

    # Live VMEM: double-buffered (tm,tk)+(tk,tn) inputs, double-buffered
    # output tile, accumulator scratch, plus generous Mosaic headroom.
    est = 4 * (2 * tm * tk + 2 * tk * tn + 2 * tm * tn + tm * tn) + (8 << 20)
    vmem_limit = int(min(max(est, 32 << 20), _vmem_cap_bytes()))

    # Stage 1: W = x23 @ x31 (balanced tiled matmul).
    w = _tiled_matmul(x23, x31, tm=tm, tn=tn, tk=tk, vmem_limit=vmem_limit)

    # Stage 2: cycle = x12 @ W with fused |cycle - I| L1-sum epilogue.
    parts = _cycle_l1_partials(
        x12, w, n_valid=n, tm=tm, tn=tn, tk=tk, vmem_limit=vmem_limit
    )

    # Each (i, j) tile emitted its L1 *sum* (broadcast over an (8,128) pad
    # block); divide by N*N exactly once -> nn.L1Loss(reduction='mean').
    return jnp.sum(parts[:, :, 0, 0]) / (n * n)


if __name__ == "__main__":
    def _ref_loss(a, b, c):
        t = jnp.matmul(a, b, precision=lax.Precision.HIGHEST)
        cyc = jnp.matmul(t, c, precision=lax.Precision.HIGHEST)
        eye = jnp.eye(a.shape[0], dtype=cyc.dtype)
        return jnp.mean(jnp.abs(cyc - eye))

    key = jax.random.PRNGKey(0)
    # 384: aligned 3x3x3 grid (init/accumulate/finalize all exercised).
    # 200: ragged N -> zero-padded to 256, exercises the masked diagonal path.
    for n in (384, 200):
        key, k1, k2, k3 = jax.random.split(key, 4)
        x12 = jax.random.normal(k1, (n, n), dtype=jnp.float32) * 0.1
        x23 = jax.random.normal(k2, (n, n), dtype=jnp.float32) * 0.1
        x31 = jax.random.normal(k3, (n, n), dtype=jnp.float32) * 0.1

        loss = cycle_loss(x12, x23, x31)
        jax.block_until_ready(loss)

        ref = _ref_loss(x12, x23, x31)
        assert jnp.allclose(loss, ref, rtol=1e-3, atol=1e-4), (n, loss, ref)

    print("KERNEL_OK")
</pallas_src>

<mosaic_0001>
module attributes {stable_mosaic.version = 11 : i64} {
  func.func @_matmul_kernel(%arg0: i32, %arg1: i32, %arg2: i32, %arg3: memref<128x128xf32, #tpu.memory_space<vmem>>, %arg4: memref<128x128xf32, #tpu.memory_space<vmem>>, %arg5: memref<128x128xf32, #tpu.memory_space<vmem>>, %arg6: memref<128x128xf32, #tpu.memory_space<vmem>>) attributes {dimension_semantics = [#tpu.dimension_semantics<parallel>, #tpu.dimension_semantics<parallel>, #tpu.dimension_semantics<arbitrary>], iteration_bounds = array<i64: 3, 3, 3>, scalar_prefetch = 0 : i64, scratch_operands = 1 : i64, tpu.core_type = #tpu.core_type<tc>, window_params = [{transform_indices = @transform_0, window_bounds = array<i64: 128, 128>}, {transform_indices = @transform_1, window_bounds = array<i64: 128, 128>}, {transform_indices = @transform_2, window_bounds = array<i64: 128, 128>}]} {
    %c0_i32 = arith.constant 0 : i32
    %0 = arith.cmpi eq, %arg2, %c0_i32 : i32
    %1 = arith.extui %0 : i1 to i32
    %c0_i32_0 = arith.constant 0 : i32
    %2 = arith.cmpi ne, %1, %c0_i32_0 : i32
    scf.if %2 {
      %cst_9 = arith.constant 0.000000e+00 : f32
      %12 = vector.broadcast %cst_9 : f32 to vector<128x128xf32>
      %c0_10 = arith.constant 0 : index
      %c0_11 = arith.constant 0 : index
      %13 = vector.load %arg6[%c0_10, %c0_11] : memref<128x128xf32, #tpu.memory_space<vmem>>, vector<128x128xf32>
      tpu.vector_store %arg6[%c0_10, %c0_11], %12 {strides = array<i32>} : memref<128x128xf32, #tpu.memory_space<vmem>>, vector<128x128xf32>,
    } else {
    }
    %c0 = arith.constant 0 : index
    %c0_1 = arith.constant 0 : index
    %3 = vector.load %arg6[%c0, %c0_1] : memref<128x128xf32, #tpu.memory_space<vmem>>, vector<128x128xf32>
    %c0_2 = arith.constant 0 : index
    %c0_3 = arith.constant 0 : index
    %4 = vector.load %arg3[%c0_2, %c0_3] : memref<128x128xf32, #tpu.memory_space<vmem>>, vector<128x128xf32>
    %c0_4 = arith.constant 0 : index
    %c0_5 = arith.constant 0 : index
    %5 = vector.load %arg4[%c0_4, %c0_5] : memref<128x128xf32, #tpu.memory_space<vmem>>, vector<128x128xf32>
    %cst = arith.constant dense<0.000000e+00> : vector<128x128xf32>
    %6 = tpu.matmul %4, %5, %cst {dimension_numbers = #tpu.dot_dimension_numbers<[1], [0], [0], [1], [0, 0, 1, 1], [], []>} : vector<128x128xf32>, vector<128x128xf32>, vector<128x128xf32> -> vector<128x128xf32>
    %7 = arith.addf %3, %6 : vector<128x128xf32>
    %c0_6 = arith.constant 0 : index
    %c0_7 = arith.constant 0 : index
    %8 = vector.load %arg6[%c0_6, %c0_7] : memref<128x128xf32, #tpu.memory_space<vmem>>, vector<128x128xf32>
    tpu.vector_store %arg6[%c0_6, %c0_7], %7 {strides = array<i32>} : memref<128x128xf32, #tpu.memory_space<vmem>>, vector<128x128xf32>,
    %c2_i32 = arith.constant 2 : i32
    %9 = arith.cmpi eq, %arg2, %c2_i32 : i32
    %10 = arith.extui %9 : i1 to i32
    %c0_i32_8 = arith.constant 0 : i32
    %11 = arith.cmpi ne, %10, %c0_i32_8 : i32
    scf.if %11 {
      %c0_9 = arith.constant 0 : index
      %c0_10 = arith.constant 0 : index
      %12 = vector.load %arg6[%c0_9, %c0_10] : memref<128x128xf32, #tpu.memory_space<vmem>>, vector<128x128xf32>
      %c0_11 = arith.constant 0 : index
      %c0_12 = arith.constant 0 : index
      %13 = vector.load %arg5[%c0_11, %c0_12] : memref<128x128xf32, #tpu.memory_space<vmem>>, vector<128x128xf32>
      tpu.vector_store %arg5[%c0_11, %c0_12], %12 {strides = array<i32>} : memref<128x128xf32, #tpu.memory_space<vmem>>, vector<128x128xf32>,
    } else {
    }
    return
  }
  func.func @transform_0(%arg0: i32, %arg1: i32, %arg2: i32) -> (i32, i32) {
    %c0_i32 = arith.constant 0 : i32
    return %arg0, %arg2 : i32, i32
  }
  func.func @transform_1(%arg0: i32, %arg1: i32, %arg2: i32) -> (i32, i32) {
    %c0_i32 = arith.constant 0 : i32
    return %arg2, %arg1 : i32, i32
  }
  func.func @transform_2(%arg0: i32, %arg1: i32, %arg2: i32) -> (i32, i32) {
    %c0_i32 = arith.constant 0 : i32
    return %arg0, %arg1 : i32, i32
  }
}

</mosaic_0001>

<bundles_post_ra>
// kernel: tpu_custom_call.1
= control target key start
LH: loop header
LB: loop body
LE: loop exit
PB: predicated region body
PF: predicated region fallthrough
CT: control target
= control target key end

     0   :  { %s1663_s0 = inlined_call_operand.hbm [shape: f32[384,384], index: 0, kind: input, shape index: {}]   ;;  %s1664_s1 = inlined_call_operand.hbm [shape: f32[384,384], index: 1, kind: input, shape index: {}]   ;;  %s1665_s2 = inlined_call_operand.hbm [shape: f32[384,384], index: 2, kind: output, shape index: {}]  }
   0x1   :  { %1683 = sst [smem:[#allocation20_spill]] %s1663_s0 }
   0x2   :  { %1684 = sst [smem:[#allocation21_spill]] %s1664_s1 }
   0x3   :  { %1685 = sst [smem:[#allocation22_spill]] %s1665_s2 }
   0x4   :  { %7 = vsyncpa [#allocation4], 0 }
   0x5   :  { %9 = vsyncpa [#allocation4 + $0x1], 0 }
   0x6   :  { %10 = vsyncpa [#allocation7], 0 }
   0x7   :  { %12 = vsyncpa [#allocation7 + $0x1], 0 }
   0x8   :  { %13 = vsyncpa [#allocation5], 0 }
   0x9   :  { %15 = vsyncpa [#allocation5 + $0x1], 0  ;;  %s1220_s9 = smov 0   ;;  %s1222_s10 = smov 0  }
   0xa   :  { %s1224_s11 = smov 0   ;;  %s1226_s12 = smov 0  }
   0xb   :  { %s1228_s13 = smov 0   ;;  %s1230_s14 = smov 0  }
   0xc   :  { %s1232_s15 = smov 0   ;;  %s1234_s16 = smov 0  }
   0xd   :  { %s1236_s17 = smov 0   ;;  %s1238_s18 = smov 0  }
   0xe   :  { %s1240_s19 = smov 0   ;;  %s1242_s20 = smov 0  }
   0xf   :  { %s1244_s21 = smov 0   ;;  %s1246_s22 = smov 0  }
  0x10   :  { %s1248_s23 = smov 0   ;;  %s1250_s24 = smov 0  }
  0x11 LB: > { %1686 = sst [smem:[#allocation12_spill]] %s1169_s18  ;;  %s650_s25 = sadd.s32 4294967295, %s1193_s24   ;;  %s1193_s24 = sphi %s1250_s24, %s21_s24   ;;  %s1189_s23 = sphi %s1248_s23, %s1746_s23   ;;  %s1185_s22 = sphi %s1246_s22, %s1745_s22   ;;  %s1181_s21 = sphi %s1244_s21, %s1744_s21   ;;  %s1177_s20 = sphi %s1242_s20, %s1743_s20   ;;  %s1173_s19 = sphi %s1240_s19, %s1742_s19   ;;  %s1169_s18 = sphi %s1238_s18, %s1741_s18   ;;  %s1165_s17 = sphi %s1236_s17, %s1740_s17   ;;  %s1161_s16 = sphi %s1234_s16, %s1739_s16   ;;  %s1157_s15 = sphi %s1232_s15, %s1738_s15   ;;  %s1153_s14 = sphi %s1230_s14, %s1737_s14   ;;  %s1149_s13 = sphi %s1228_s13, %s1736_s13   ;;  %s1145_s12 = sphi %s1226_s12, %s1735_s12   ;;  %s1141_s11 = sphi %s1224_s11, %s1734_s11   ;;  %s1137_s10 = sphi %s1222_s10, %s1733_s10   ;;  %s1133_s9 = sphi %s1220_s9, %s1732_s9  }
  0x12   : > { %1687 = sst [smem:[#allocation13_spill]] %s1173_s19  ;;  %s33_s26 = sadd.s32 1, %s1181_s21 }
  0x13   : > { %1688 = sst [smem:[#allocation14_spill]] %s1177_s20  ;;  %p1300_p0 = scmp.ge.s32.totalorder %s33_s26, 3 }
  0x14   : > { %p56_p1 = scmp.ne.s32.totalorder %s1165_s17, %s1161_s16  ;;  %p1669_p2 = scmp.eq.s32.totalorder %s1193_s24, 0 }
  0x15   : > { %s1748_s26 = smov (%p1300_p0, %s33_s26), 0  ;;  %p62_p3 = scmp.ne.s32.totalorder %s1161_s16, %s1157_s15 }
  0x16   : > { %1690 = sst [smem:[#allocation15_spill]] %s1748_s26  ;;  %s1316_s30 = ssub.s32 %s1181_s21, %s1748_s26 }
  0x17   : > { %p1318_p4 = scmp.eq.s32.totalorder %s650_s25, 0  ;;  %p58_p5 = por %p1669_p2, %p56_p1 }
  0x18   : > { %p1324_p6 = scmp.eq.s32.totalorder %s650_s25, 26  ;;  %p1668_p8 = scmp.lt.s32.totalorder %s1193_s24, 27 }
  0x19   : > { %s1691_s3 = scalar_select %p1318_p4, 1, 0 }
  0x1a   : > { %s1692_s4 = scalar_select %p1324_p6, 1, 0 }
  0x1b   : > { %p1330_p7 = por %p1318_p4, %p62_p3  ;;  %s142_s6 = sand.u32 1, %s1165_s17  }
  0x1c   : > { %s654_s7 = sshll.u32 %s142_s6, 7  ;;  %s810_s8 = smul.u32 48, %s1189_s23 }
  0x1d   : > { %s1693_s5 = scalar_select %p1330_p7, 1, 0 }
  0x1e   : > { %s146_s15 = scalar_lea.vmem [#allocation3], %s654_s7  ;;  %p1339_p9 = pnand %p1668_p8, %p58_p5 }
  0x1f   : > { %s155_s29 = sshll.u32 %s146_s15, 4  ;;  %s152_s25 = sadd.s32 %s1181_s21, %s810_s8  ;;  %s1344_s29 = int_to_ptr.vmem [resolvable:$true] %s155_s29 }
  0x20   : > { %s657_s26 = sshll.u32 %s152_s25, 7  ;;  %s1695_s0 = sld [smem:[#allocation20_spill]] }
  0x21   : > { %s1351_s7 = scalar_lea.sflag [#allocation4], %s142_s6  ;;  %p969_p11 = pneg %p1339_p9 }
  0x26   : > { %s1349_s20 = scalar_lea.hbm %s1695_s0, %s657_s26  ;;  %s972_s2 = scalar_lea.hbm %s1695_s0, 18432 }
  0x27   : > { %s967_s15 = scalar_lea.hbm %s1349_s20, 2048  ;;  %p973_p1 = scmp.lt.u32.totalorder %s1349_s20, %s1695_s0 }
  0x28   : > { %p968_p10 = scmp.ne.s32.totalorder %s1349_s20, %s967_s15  ;;  %p974_p3 = scmp.lt.u32.totalorder %s972_s2, %s967_s15 }
  0x29   : > { %p976_p8 = scmp.lt.u32.totalorder %s967_s15, %s1349_s20 }
  0x2a   : > { %p970_p12 = pnand %p969_p11, %p968_p10  ;;  %p975_p5 = por %p974_p3, %p973_p1 }
  0x2c   : > { %p971_p13 = pneg %p970_p12  ;;  %p977_p2 = por %p976_p8, %p975_p5 }
  0x2e   : > { %p978_p7 = pnand %p977_p2, %p971_p13 }
  0x30   : > { %981 = shalt.err (!%p978_p7)
}
  0x31   : > { %s982_s6 = scalar_lea.vmem %s1344_s29, 2048  ;;  %s1195_s8 = smov [#allocation3]  }
  0x32   : > { %p983_p10 = scmp.ne.s32.totalorder %s1344_s29, %s982_s6  ;;  %s987_s25 = sshll.u32 %s1195_s8, 4  ;;  %s988_s25 = int_to_ptr.vmem [resolvable:$false] %s987_s25 }
  0x33   : > { %s989_s19 = scalar_lea.vmem %s988_s25, 4096  ;;  %p990_p4 = scmp.lt.s32.totalorder %s1344_s29, %s988_s25 }
  0x34   : > { %p985_p12 = pnand %p983_p10, %p969_p11  ;;  %p991_p1 = scmp.lt.s32.totalorder %s989_s19, %s982_s6 }
  0x36   : > { %p986_p6 = pneg %p985_p12  ;;  %p992_p3 = por %p991_p1, %p990_p4 }
  0x38   : > { %p993_p8 = pnand %p992_p3, %p986_p6 }
  0x3a   : > { %996 = shalt.err (!%p993_p8)
}
  0x3b   : > { %s1672_s15 = smov 384   ;;  %s1673_s2 = smov 128  }
  0x3c   : > { %s1674_s26 = smov 8   ;;  %p662_p2 = scmp.ge.s32.totalorder %s1193_s24, 1 }
  0x3d   : > { %822 = dma.hbm_to_vmem [thread:$0]  (!%p1339_p9), %s1349_s20, 2048, %s1344_s29, %s1351_s7, %s1672_s15, %s1673_s2, %s1674_s26  }
  0x3e   : > { %p186_p4 = scmp.lt.s32.totalorder %s1193_s24, 28  ;;  %s651_s8 = sadd.s32 4294967294, %s1193_s24  }
  0x3f   : > { %s36_s25 = sadd.s32 1, %s1185_s22  ;;  %s77_s28 = sadd.s32 1, %s1153_s14 }
  0x40   : > { %p1384_p6 = pnand %p662_p2, %p186_p4  ;;  %s1750_s25 = smov (!%p1300_p0, %s36_s25), %s1185_s22 }
  0x41   : > { %p84_p7 = scmp.ne.s32.totalorder %s1153_s14, %s1149_s13  ;;  %p90_p9 = scmp.ne.s32.totalorder %s1149_s13, %s1145_s12 }
  0x42   : > { %p38_p11 = scmp.ge.s32.totalorder %s1750_s25, 3  ;;  %s105_s20 = sadd.s32 1, %s1141_s11 }
  0x43   : > { %p1697_p13 = scmp.eq.s32.totalorder %s1193_s24, 0  ;;  %p1699_p10 = scmp.ne.s32.totalorder %s1691_s3, 0 }
  0x44   : > { %s1752_s25 = smov (%p38_p11, %s1750_s25), 0  ;;  %s1703_s27 = sadd.s32 1, %s1189_s23 }
  0x45   : > { %p1401_p5 = por %p84_p7, %p1697_p13  ;;  %p1407_p12 = por %p90_p9, %p1699_p10 }
  0x46   : > { %1702 = sst [smem:[#allocation17_spill]] %s1752_s25  ;;  %s1754_s27 = smov (!%p38_p11, %s1703_s27), %s1189_s23 }
  0x47   : > { %s1700_s7 = scalar_select %p1407_p12, 1, 0 }
  0x48   : > { %s73_s12 = ssub.s32 %s1185_s22, %s1752_s25  ;;  %p115_p0 = scmp.ne.s32.totalorder %s1141_s11, %s1137_s10 }
  0x49   : > { %1701 = sst [smem:[#allocation16_spill]] %s1700_s7  ;;  %p42_p1 = scmp.ge.s32.totalorder %s1754_s27, 3 }
  0x4a   : > { %s74_s19 = sor.u32 %s73_s12, %s1316_s30  ;;  %p1704_p8 = scmp.ne.s32.totalorder %s1692_s4, 0 }
  0x4b   : > { %p75_p3 = scmp.eq.s32.totalorder %s74_s19, 0  ;;  %s1756_s27 = smov (%p42_p1, %s1754_s27), 0 }
  0x4c   : > { %p1423_p2 = por %p1704_p8, %p115_p0  ;;  %1707 = sst [smem:[#allocation19_spill]] %s1756_s27 }
  0x4d   : > { %s1430_s15 = scalar_select %p75_p3, %s1153_s14, %s77_s28  }
  0x4e   : > { %s1705_s3 = scalar_select %p1423_p2, 1, 0 }
  0x4f   : > { %s44_s2 = ssub.s32 %s1189_s23, %s1756_s27  ;;  %p121_p4 = scmp.ne.s32.totalorder %s1137_s10, %s1133_s9 }
  0x50   : > { %1706 = sst [smem:[#allocation18_spill]] %s1705_s3  ;;  %s46_s26 = sor.u32 %s1316_s30, %s44_s2 }
  0x51   : > { %s102_s0 = sor.u32 %s73_s12, %s44_s2  ;;  %p47_p7 = scmp.eq.s32.totalorder %s46_s26, 0 }
  0x52   : > { %p103_p9 = scmp.eq.s32.totalorder %s102_s0, 0  ;;  %p122_p11 = scmp.eq.s32.totalorder %s651_s8, 26 }
  0x53   : > { %s165_s4 = sand.u32 1, %s1153_s14   ;;  %s1708_s19 = sadd.s32 1, %s1165_s17 }
  0x54   : > { %s1441_s25 = scalar_select %p47_p7, %s1165_s17, %s1708_s19  }
  0x55   : > { %s1444_s3 = scalar_select %p103_p9, %s1141_s11, %s105_s20  }
  0x56   : > { %p1446_p13 = por %p122_p11, %p121_p4  ;;  %s658_s7 = sshll.u32 %s165_s4, 7 }
  0x57   : > { %s811_s28 = smul.u32 48, %s1181_s21  ;;  %p1710_p10 = scmp.lt.s32.totalorder %s1193_s24, 27 }
  0x58   : > { %s1709_s18 = scalar_select %p1446_p13, 1, 0 }
  0x59   : > { %p1455_p0 = pnand %p1710_p10, %p1401_p5  ;;  %s175_s0 = sadd.s32 %s1185_s22, %s811_s28 }
  0x5a   : > { %s169_s2 = scalar_lea.vmem [#allocation6], %s658_s7  ;;  %s661_s8 = sshll.u32 %s175_s0, 7 }
  0x5b   : > { %s178_s26 = sshll.u32 %s169_s2, 4  ;;  %s1712_s1 = sld [smem:[#allocation21_spill]]  ;;  %s1460_s26 = int_to_ptr.vmem [resolvable:$true] %s178_s26 }
  0x5c   : > { %s1467_s29 = scalar_lea.sflag [#allocation7], %s165_s4  ;;  %p999_p1 = pneg %p1455_p0 }
  0x61   : > { %s1465_s19 = scalar_lea.hbm %s1712_s1, %s661_s8  ;;  %s1002_s0 = scalar_lea.hbm %s1712_s1, 18432 }
  0x62   : > { %s997_s27 = scalar_lea.hbm %s1465_s19, 2048  ;;  %p1003_p4 = scmp.lt.u32.totalorder %s1465_s19, %s1712_s1 }
  0x63   : > { %p998_p5 = scmp.ne.s32.totalorder %s1465_s19, %s997_s27  ;;  %p1004_p7 = scmp.lt.u32.totalorder %s1002_s0, %s997_s27 }
  0x64   : > { %p1006_p11 = scmp.lt.u32.totalorder %s997_s27, %s1465_s19 }
  0x65   : > { %p1000_p3 = pnand %p999_p1, %p998_p5  ;;  %p1005_p9 = por %p1004_p7, %p1003_p4 }
  0x67   : > { %p1001_p8 = pneg %p1000_p3  ;;  %p1007_p10 = por %p1006_p11, %p1005_p9 }
  0x69   : > { %p1008_p13 = pnand %p1007_p10, %p1001_p8 }
  0x6b   : > { %1011 = shalt.err (!%p1008_p13)
}
  0x6c   : > { %s1012_s4 = scalar_lea.vmem %s1460_s26, 2048  ;;  %s1199_s20 = smov [#allocation6]  }
  0x6d   : > { %p1013_p5 = scmp.ne.s32.totalorder %s1460_s26, %s1012_s4  ;;  %s1017_s12 = sshll.u32 %s1199_s20, 4  ;;  %s1018_s12 = int_to_ptr.vmem [resolvable:$false] %s1017_s12 }
  0x6e   : > { %s1019_s7 = scalar_lea.vmem %s1018_s12, 4096  ;;  %p1020_p12 = scmp.lt.s32.totalorder %s1460_s26, %s1018_s12 }
  0x6f   : > { %p1015_p3 = pnand %p1013_p5, %p999_p1  ;;  %p1021_p4 = scmp.lt.s32.totalorder %s1019_s7, %s1012_s4 }
  0x71   : > { %p1016_p2 = pneg %p1015_p3  ;;  %p1022_p7 = por %p1021_p4, %p1020_p12 }
  0x73   : > { %p1023_p9 = pnand %p1022_p7, %p1016_p2 }
  0x75   : > { %1026 = shalt.err (!%p1023_p9)
}
  0x76   : > { %s1713_s27 = smov 8   ;;  %s1714_s28 = smov 128  }
  0x77   : > { %s1715_s0 = smov 384   ;;  %190 = sbr.rel (%p1384_p6) target bundleno = 456 (0x1c8), region = 28 }
  0x78   : > { %825 = dma.hbm_to_vmem [thread:$0]  (!%p1455_p0), %s1465_s19, 2048, %s1460_s26, %s1467_s29, %s1715_s0, %s1714_s28, %s1713_s27  }
  0x79   : > { %s192_s2 = sand.u32 (!%p1384_p6), 1, %s1161_s16   ;;  %p1716_p12 = scmp.ne.s32.totalorder (!%p1384_p6), %s1693_s5, 0 }
  0x7a   : > { %s663_s8 = sshll.u32 (!%p1384_p6), %s192_s2, 7  ;;  %s193_s4 = scalar_lea.sflag (!%p1384_p6), [#allocation4], %s192_s2 }
  0x7b   : > { %s1501_s20 = scalar_lea.vmem (!%p1384_p6), [#allocation3], %s663_s8 }
  0x7e   : > { %1120 = dma.done.wait (%p1716_p12), %s193_s4, 2048  }
  0x7f   : > { %1122 = vsyncadd (%p1716_p12), %s193_s4, 4294965248  ;;  %s1717_s30 = sld [smem:[#allocation16_spill]]  ;;  %s201_s12 = sand.u32 1, %s1149_s13  }
  0x80   : > { %s664_s7 = sshll.u32 %s201_s12, 7  ;;  %s202_s26 = scalar_lea.sflag [#allocation7], %s201_s12 }
  0x81   : > { %s1508_s19 = scalar_lea.vmem [#allocation6], %s664_s7 }
  0x85   : > { %p1718_p6 = scmp.ne.s32.totalorder %s1717_s30, 0 }
  0x87   : > { %1124 = dma.done.wait (%p1718_p6), %s202_s26, 2048  }
  0x88   : > { %1126 = vsyncadd (%p1718_p6), %s202_s26, 4294965248  ;;  %s228_s6 = sand.u32 1, %s1137_s10   ;;  %s1719_s5 = sld [smem:[#allocation12_spill]] }
  0x89   : > { %s665_s29 = sshll.u32 %s228_s6, 7 }
  0x8a   : > { %s1517_s27 = scalar_lea.vmem [#allocation8], %s665_s29 }
  0x8e   : > { %p666_p2 = scmp.ne.s32.totalorder %s1719_s5, 0 }
  0x8f   : > { %v1200_v0 = vmov (!%p666_p2), 0.0  }
  0x90   : > { %237 = sbr.rel (%p666_p2) target bundleno = 152 (0x98), region = 40  ;;  %238 = vst [vmem:[#allocation2] sm:$0xff] (!%p666_p2), %v1200_v0  ;;  %239 = vst [vmem:[#allocation2 + $0x8] sm:$0xff] (!%p666_p2), %v1200_v0 }
  0x91   : > { %240 = vst [vmem:[#allocation2 + $0x10] sm:$0xff] (!%p666_p2), %v1200_v0  ;;  %241 = vst [vmem:[#allocation2 + $0x18] sm:$0xff] (!%p666_p2), %v1200_v0 }
  0x92   : > { %242 = vst [vmem:[#allocation2 + $0x20] sm:$0xff] (!%p666_p2), %v1200_v0  ;;  %243 = vst [vmem:[#allocation2 + $0x28] sm:$0xff] (!%p666_p2), %v1200_v0 }
  0x93   : > { %244 = vst [vmem:[#allocation2 + $0x30] sm:$0xff] (!%p666_p2), %v1200_v0  ;;  %245 = vst [vmem:[#allocation2 + $0x38] sm:$0xff] (!%p666_p2), %v1200_v0 }
  0x94   : > { %246 = vst [vmem:[#allocation2 + $0x40] sm:$0xff] (!%p666_p2), %v1200_v0  ;;  %247 = vst [vmem:[#allocation2 + $0x48] sm:$0xff] (!%p666_p2), %v1200_v0 }
  0x95   : > { %248 = vst [vmem:[#allocation2 + $0x50] sm:$0xff] (!%p666_p2), %v1200_v0  ;;  %249 = vst [vmem:[#allocation2 + $0x58] sm:$0xff] (!%p666_p2), %v1200_v0 }
  0x96   : > { %250 = vst [vmem:[#allocation2 + $0x60] sm:$0xff] (!%p666_p2), %v1200_v0  ;;  %251 = vst [vmem:[#allocation2 + $0x68] sm:$0xff] (!%p666_p2), %v1200_v0 }
  0x97   : > { %252 = vst [vmem:[#allocation2 + $0x70] sm:$0xff] %v1200_v0  ;;  %253 = vst [vmem:[#allocation2 + $0x78] sm:$0xff] %v1200_v0 }
  0x98 PF: > { %v286_v1 = vld [vmem:[%s1508_s19] sm:$0xff]  ;;  %v287_v2 = vld [vmem:[%s1508_s19 + $0x8] sm:$0xff]  ;;  %v288_v3 = vld [vmem:[%s1508_s19 + $0x10] sm:$0xff]  ;;  %s1720_s28 = sld [smem:[#allocation12_spill]] }
  0x99   : > { %v762_v4 = vpack.c.bf16 %v287_v2, %v286_v1  ;;  %v289_v5 = vld [vmem:[%s1508_s19 + $0x18] sm:$0xff]  ;;  %v290_v7 = vld [vmem:[%s1508_s19 + $0x20] sm:$0xff]  ;;  %v291_v8 = vld [vmem:[%s1508_s19 + $0x28] sm:$0xff] }
  0x9a   : > { %v766_v6 = vpack.c.bf16 %v289_v5, %v288_v3  ;;  %v770_v9 = vpack.c.bf16 %v291_v8, %v290_v7  ;;  %v270_v10 = vld [vmem:[%s1501_s20] sm:$0xff]  ;;  %v292_v12 = vld [vmem:[%s1508_s19 + $0x30] sm:$0xff]  ;;  %v293_v13 = vld [vmem:[%s1508_s19 + $0x38] sm:$0xff] }
  0x9b   : > { %763 = vmatprep.subr.bf16.mxu0 %v762_v4  ;;  %794 = vmatprep.subr.bf16.mxu1 %v762_v4  ;;  %v278_v11 = vld [vmem:[%s1501_s20 + $0x40] sm:$0xff]  ;;  %v774_v14 = vpack.c.bf16 %v293_v13, %v292_v12  ;;  %v295_v16 = vld [vmem:[%s1508_s19 + $0x48] sm:$0xff]  ;;  %v296_v18 = vld [vmem:[%s1508_s19 + $0x50] sm:$0xff] }
  0x9c   : > { %765 = vmatpush3.bf16.msra.mxu0 %v762_v4  ;;  %802 = vmatpush3.bf16.msra.mxu1 %v762_v4  ;;  %v294_v15 = vld [vmem:[%s1508_s19 + $0x40] sm:$0xff]  ;;  %v297_v19 = vld [vmem:[%s1508_s19 + $0x58] sm:$0xff]  ;;  %v299_v22 = vld [vmem:[%s1508_s19 + $0x68] sm:$0xff] }
  0x9d   : > { %767 = vmatprep.subr.bf16.mxu0 %v766_v6  ;;  %795 = vmatprep.subr.bf16.mxu1 %v766_v6  ;;  %v778_v17 = vpack.c.bf16 %v295_v16, %v294_v15  ;;  %v782_v20 = vpack.c.bf16 %v297_v19, %v296_v18  ;;  %v298_v21 = vld [vmem:[%s1508_s19 + $0x60] sm:$0xff]  ;;  %v300_v24 = vld [vmem:[%s1508_s19 + $0x70] sm:$0xff]  ;;  %v301_v25 = vld [vmem:[%s1508_s19 + $0x78] sm:$0xff] }
  0x9e   : > { %738 = vmatprep.mubr.f32.mxu0 %v270_v10  ;;  %750 = vmatprep.mubr.f32.mxu1 %v278_v11  ;;  %v786_v23 = vpack.c.bf16 %v299_v22, %v298_v21  ;;  %v790_v26 = vpack.c.bf16 %v301_v25, %v300_v24  ;;  %v271_v27 = vld [vmem:[%s1501_s20 + $0x8] sm:$0xff]  ;;  %v272_v29 = vld [vmem:[%s1501_s20 + $0x10] sm:$0xff]  ;;  %v273_v31 = vld [vmem:[%s1501_s20 + $0x18] sm:$0xff]  ;;  %p667_p13 = scmp.ne.s32.totalorder %s1720_s28, 2 }
  0x9f   : > { %v279_v28 = vld [vmem:[%s1501_s20 + $0x48] sm:$0xff]  ;;  %v280_v30 = vld [vmem:[%s1501_s20 + $0x50] sm:$0xff]  ;;  %v281_v32 = vld [vmem:[%s1501_s20 + $0x58] sm:$0xff] }
  0xa0   : > { %769 = vmatpush3.bf16.msra.mxu0 %v766_v6  ;;  %803 = vmatpush3.bf16.msra.mxu1 %v766_v6  ;;  %v274_v33 = vld [vmem:[%s1501_s20 + $0x20] sm:$0xff]  ;;  %v275_v35 = vld [vmem:[%s1501_s20 + $0x28] sm:$0xff]  ;;  %v276_v37 = vld [vmem:[%s1501_s20 + $0x30] sm:$0xff] }
  0xa1   : > { %771 = vmatprep.subr.bf16.mxu0 %v770_v9  ;;  %796 = vmatprep.subr.bf16.mxu1 %v770_v9  ;;  %v282_v34 = vld [vmem:[%s1501_s20 + $0x60] sm:$0xff]  ;;  %v283_v36 = vld [vmem:[%s1501_s20 + $0x68] sm:$0xff]  ;;  %v284_v38 = vld [vmem:[%s1501_s20 + $0x70] sm:$0xff] }
  0xa2   : > { %v277_v39 = vld [vmem:[%s1501_s20 + $0x38] sm:$0xff]  ;;  %v255_v41 = vld [vmem:[#allocation2 + $0x8] sm:$0xff]  ;;  %v254_v43 = vld [vmem:[#allocation2] sm:$0xff] }
  0xa3   : > { %v285_v40 = vld [vmem:[%s1501_s20 + $0x78] sm:$0xff]  ;;  %v263_v42 = vld [vmem:[#allocation2 + $0x48] sm:$0xff]  ;;  %v262_v44 = vld [vmem:[#allocation2 + $0x40] sm:$0xff] }
  0xa4   : > { %773 = vmatpush3.bf16.msra.mxu0 %v770_v9  ;;  %804 = vmatpush3.bf16.msra.mxu1 %v770_v9  ;;  %v257_v53 = vld [vmem:[#allocation2 + $0x18] sm:$0xff]  ;;  %v256_v55 = vld [vmem:[#allocation2 + $0x10] sm:$0xff]  ;;  %v259_v1 = vld [vmem:[#allocation2 + $0x28] sm:$0xff] }
  0xa5   : > { %775 = vmatprep.subr.bf16.mxu0 %v774_v14  ;;  %797 = vmatprep.subr.bf16.mxu1 %v774_v14  ;;  %v265_v54 = vld [vmem:[#allocation2 + $0x58] sm:$0xff]  ;;  %v264_v56 = vld [vmem:[#allocation2 + $0x50] sm:$0xff]  ;;  %v267_v2 = vld [vmem:[#allocation2 + $0x68] sm:$0xff] }
  0xa6   : > { %v258_v3 = vld [vmem:[#allocation2 + $0x20] sm:$0xff]  ;;  %v261_v13 = vld [vmem:[#allocation2 + $0x38] sm:$0xff]  ;;  %v260_v15 = vld [vmem:[#allocation2 + $0x30] sm:$0xff] }
  0xa7   : > { %v266_v4 = vld [vmem:[#allocation2 + $0x60] sm:$0xff]  ;;  %v268_v16 = vld [vmem:[#allocation2 + $0x70] sm:$0xff] }
  0xa8   : > { %777 = vmatpush3.bf16.msra.mxu0 %v774_v14  ;;  %805 = vmatpush3.bf16.msra.mxu1 %v774_v14  ;;  %v269_v14 = vld [vmem:[#allocation2 + $0x78] sm:$0xff] }
  0xa9   : > { %779 = vmatprep.subr.bf16.mxu0 %v778_v17  ;;  %798 = vmatprep.subr.bf16.mxu1 %v778_v17 }
  0xac   : > { %781 = vmatpush3.bf16.msra.mxu0 %v778_v17  ;;  %806 = vmatpush3.bf16.msra.mxu1 %v778_v17 }
  0xad   : > { %783 = vmatprep.subr.bf16.mxu0 %v782_v20  ;;  %799 = vmatprep.subr.bf16.mxu1 %v782_v20 }
  0xb0   : > { %785 = vmatpush3.bf16.msra.mxu0 %v782_v20  ;;  %807 = vmatpush3.bf16.msra.mxu1 %v782_v20 }
  0xb1   : > { %787 = vmatprep.subr.bf16.mxu0 %v786_v23  ;;  %800 = vmatprep.subr.bf16.mxu1 %v786_v23 }
  0xb4   : > { %789 = vmatpush3.bf16.msra.mxu0 %v786_v23  ;;  %808 = vmatpush3.bf16.msra.mxu1 %v786_v23 }
  0xb5   : > { %791 = vmatprep.subr.bf16.mxu0 %v790_v26  ;;  %801 = vmatprep.subr.bf16.mxu1 %v790_v26 }
  0xb8   : > { %793 = vmatpush3.bf16.msra.mxu0 %v790_v26  ;;  %809 = vmatpush3.bf16.msra.mxu1 %v790_v26 }
  0xbb   : > { %739 = vmatmul.mubr.f32.vlgmr.msra.gmra.mrb[0].mxu0 %v271_v27  ;;  %751 = vmatmul.mubr.f32.vlgmr.msra.gmra.mrb[0].mxu1 %v279_v28 }
  0xbc   : > { %741 = vmatprep.mubr.f32.mxu0 %v272_v29  ;;  %753 = vmatprep.mubr.f32.mxu1 %v280_v30 }
  0xbf   : > { %742 = vmatmul.mubr.f32.gmra.mrb[2].mxu0 %v273_v31  ;;  %754 = vmatmul.mubr.f32.gmra.mrb[2].mxu1 %v281_v32 }
  0xc0   : > { %744 = vmatprep.mubr.f32.mxu0 %v274_v33  ;;  %756 = vmatprep.mubr.f32.mxu1 %v282_v34 }
  0xc3   : > { %745 = vmatmul.mubr.f32.gmra.mrb[4].mxu0 %v275_v35  ;;  %757 = vmatmul.mubr.f32.gmra.mrb[4].mxu1 %v283_v36 }
  0xc4   : > { %747 = vmatprep.mubr.f32.mxu0 %v276_v37  ;;  %759 = vmatprep.mubr.f32.mxu1 %v284_v38 }
  0xc7   : > { %748 = vmatmul.mubr.f32.gmra.mrb[6].mxu0 %v277_v39  ;;  %760 = vmatmul.mubr.f32.gmra.mrb[6].mxu1 %v285_v40 }
 0x18e   : > { %v740_v45 = vpop.f32.mrb[0].mxu0  ;;  %v752_v46 = vpop.f32.mrb[0].mxu1 }
 0x18f   : > { %v448_v47 = vadd.f32 %v740_v45, %v255_v41  ;;  %v456_v48 = vadd.f32 %v752_v46, %v263_v42  ;;  %v368_v49 = vpop.f32.mrb[1].mxu0  ;;  %v408_v50 = vpop.f32.mrb[1].mxu1 }
 0x190   : > { %v447_v51 = vadd.f32 %v368_v49, %v254_v43  ;;  %v455_v52 = vadd.f32 %v408_v50, %v262_v44 }
 0x191   : > { %464 = vst [vmem:[#allocation2 + $0x8] sm:$0xff] %v448_v47  ;;  %472 = vst [vmem:[#allocation2 + $0x48] sm:$0xff] %v456_v48 }
 0x192   : > { %463 = vst [vmem:[#allocation2] sm:$0xff] %v447_v51  ;;  %471 = vst [vmem:[#allocation2 + $0x40] sm:$0xff] %v455_v52  ;;  %v743_v57 = vpop.f32.mrb[2].mxu0  ;;  %v755_v58 = vpop.f32.mrb[2].mxu1 }
 0x193   : > { %v450_v59 = vadd.f32 %v743_v57, %v257_v53  ;;  %v458_v60 = vadd.f32 %v755_v58, %v265_v54  ;;  %v378_v61 = vpop.f32.mrb[3].mxu0  ;;  %v418_v62 = vpop.f32.mrb[3].mxu1 }
 0x194   : > { %v449_v63 = vadd.f32 %v378_v61, %v256_v55  ;;  %v457_v0 = vadd.f32 %v418_v62, %v264_v56 }
 0x195   : > { %466 = vst [vmem:[#allocation2 + $0x18] sm:$0xff] %v450_v59  ;;  %474 = vst [vmem:[#allocation2 + $0x58] sm:$0xff] %v458_v60 }
 0x196   : > { %465 = vst [vmem:[#allocation2 + $0x10] sm:$0xff] %v449_v63  ;;  %473 = vst [vmem:[#allocation2 + $0x50] sm:$0xff] %v457_v0  ;;  %v746_v5 = vpop.f32.mrb[4].mxu0  ;;  %v758_v6 = vpop.f32.mrb[4].mxu1 }
 0x197   : > { %v452_v7 = vadd.f32 %v746_v5, %v259_v1  ;;  %v460_v8 = vadd.f32 %v758_v6, %v267_v2  ;;  %v388_v9 = vpop.f32.mrb[5].mxu0  ;;  %v428_v10 = vpop.f32.mrb[5].mxu1 }
 0x198   : > { %v451_v11 = vadd.f32 %v388_v9, %v258_v3  ;;  %v459_v12 = vadd.f32 %v428_v10, %v266_v4  ;;  %482 = sbr.rel (%p667_p13) target bundleno = 424 (0x1a8), region = 44  ;;  %v484_v26 = vld [vmem:[#allocation2 + $0x8] sm:$0xff] (!%p667_p13) }
 0x199   : > { %468 = vst [vmem:[#allocation2 + $0x28] sm:$0xff] %v452_v7  ;;  %476 = vst [vmem:[#allocation2 + $0x68] sm:$0xff] %v460_v8  ;;  %v483_v25 = vld [vmem:[#allocation2] sm:$0xff] (!%p667_p13)  ;;  %v492_v34 = vld [vmem:[#allocation2 + $0x48] sm:$0xff] (!%p667_p13) }
 0x19a   : > { %467 = vst [vmem:[#allocation2 + $0x20] sm:$0xff] %v451_v11  ;;  %475 = vst [vmem:[#allocation2 + $0x60] sm:$0xff] %v459_v12  ;;  %v749_v17 = vpop.f32.mrb[6].mxu0  ;;  %v761_v18 = vpop.f32.mrb[6].mxu1  ;;  %v491_v33 = vld [vmem:[#allocation2 + $0x40] sm:$0xff] (!%p667_p13) }
 0x19b   : > { %v454_v19 = vadd.f32 %v749_v17, %v261_v13  ;;  %v462_v20 = vadd.f32 %v761_v18, %v269_v14  ;;  %v398_v21 = vpop.f32.mrb[7].mxu0  ;;  %v438_v22 = vpop.f32.mrb[7].mxu1  ;;  %499 = vst [vmem:[%s1517_s27] sm:$0xff] (!%p667_p13), %v483_v25  ;;  %500 = vst [vmem:[%s1517_s27 + $0x8] sm:$0xff] (!%p667_p13), %v484_v26 }
 0x19c   : > { %v453_v23 = vadd.f32 %v398_v21, %v260_v15  ;;  %v461_v24 = vadd.f32 %v438_v22, %v268_v16  ;;  %v486_v28 = vld [vmem:[#allocation2 + $0x18] sm:$0xff] (!%p667_p13)  ;;  %507 = vst [vmem:[%s1517_s27 + $0x40] sm:$0xff] (!%p667_p13), %v491_v33  ;;  %508 = vst [vmem:[%s1517_s27 + $0x48] sm:$0xff] (!%p667_p13), %v492_v34 }
 0x19d   : > { %470 = vst [vmem:[#allocation2 + $0x38] sm:$0xff] %v454_v19  ;;  %478 = vst [vmem:[#allocation2 + $0x78] sm:$0xff] %v462_v20  ;;  %v485_v27 = vld [vmem:[#allocation2 + $0x10] sm:$0xff] (!%p667_p13)  ;;  %v494_v36 = vld [vmem:[#allocation2 + $0x58] sm:$0xff] (!%p667_p13) }
 0x19e   : > { %469 = vst [vmem:[#allocation2 + $0x30] sm:$0xff] %v453_v23  ;;  %477 = vst [vmem:[#allocation2 + $0x70] sm:$0xff] %v461_v24  ;;  %v493_v35 = vld [vmem:[#allocation2 + $0x50] sm:$0xff] (!%p667_p13) }
 0x19f   : > { %501 = vst [vmem:[%s1517_s27 + $0x10] sm:$0xff] %v485_v27  ;;  %502 = vst [vmem:[%s1517_s27 + $0x18] sm:$0xff] %v486_v28 }
 0x1a0   : > { %v488_v30 = vld [vmem:[#allocation2 + $0x28] sm:$0xff]  ;;  %509 = vst [vmem:[%s1517_s27 + $0x50] sm:$0xff] %v493_v35  ;;  %510 = vst [vmem:[%s1517_s27 + $0x58] sm:$0xff] %v494_v36 }
 0x1a1   : > { %v487_v29 = vld [vmem:[#allocation2 + $0x20] sm:$0xff]  ;;  %504 = vst [vmem:[%s1517_s27 + $0x28] sm:$0xff] %v488_v30  ;;  %v496_v38 = vld [vmem:[#allocation2 + $0x68] sm:$0xff] }
 0x1a2   : > { %503 = vst [vmem:[%s1517_s27 + $0x20] sm:$0xff] %v487_v29  ;;  %v495_v37 = vld [vmem:[#allocation2 + $0x60] sm:$0xff]  ;;  %512 = vst [vmem:[%s1517_s27 + $0x68] sm:$0xff] %v496_v38 }
 0x1a3   : > { %511 = vst [vmem:[%s1517_s27 + $0x60] sm:$0xff] %v495_v37 }
 0x1a4   : > { %v490_v32 = vld [vmem:[#allocation2 + $0x38] sm:$0xff] }
 0x1a5   : > { %v489_v31 = vld [vmem:[#allocation2 + $0x30] sm:$0xff]  ;;  %506 = vst [vmem:[%s1517_s27 + $0x38] sm:$0xff] %v490_v32  ;;  %v498_v40 = vld [vmem:[#allocation2 + $0x78] sm:$0xff] }
 0x1a6   : > { %505 = vst [vmem:[%s1517_s27 + $0x30] sm:$0xff] %v489_v31  ;;  %v497_v39 = vld [vmem:[#allocation2 + $0x70] sm:$0xff]  ;;  %514 = vst [vmem:[%s1517_s27 + $0x78] sm:$0xff] %v498_v40 }
 0x1a7   : > { %513 = vst [vmem:[%s1517_s27 + $0x70] sm:$0xff] %v497_v39 }
 0x1a8 PF: > { %s1721_s0 = sld [smem:[#allocation14_spill]]  ;;  %s1722_s2 = sld [smem:[#allocation13_spill]] }
 0x1a9   : > { %s1723_s8 = sld [smem:[#allocation18_spill]]  ;;  %s531_s20 = sshll.u32 %s1517_s27, 4  ;;  %s1572_s20 = int_to_ptr.vmem [resolvable:$true] %s531_s20 }
 0x1aa   : > { %s1724_s19 = sld [smem:[#allocation22_spill]]  ;;  %s1581_s28 = scalar_lea.sflag [#allocation5], %s228_s6 }
 0x1ab   : > { %s1027_s1 = scalar_lea.vmem %s1572_s20, 2048  ;;  %s1201_s27 = smov [#allocation8]  }
 0x1ac   : > { %p1028_p0 = scmp.ne.s32.totalorder %s1572_s20, %s1027_s1 }
 0x1ae   : > { %s812_s4 = smul.u32 48, %s1721_s0  ;;  %s1031_s0 = sshll.u32 %s1201_s27, 4  ;;  %s1032_s0 = int_to_ptr.vmem [resolvable:$false] %s1031_s0 }
 0x1af   : > { %p1726_p1 = scmp.ne.s32.totalorder %s1723_s8, 0  ;;  %p1034_p10 = scmp.lt.s32.totalorder %s1572_s20, %s1032_s0 }
 0x1b0   : > { %s528_s30 = sadd.s32 %s1722_s2, %s812_s4  ;;  %s1725_s29 = smov %s1724_s19 }
 0x1b1   : > { %s671_s12 = sshll.u32 %s528_s30, 7  ;;  %p1029_p8 = pnand %p1028_p0, %p1726_p1 }
 0x1b2   : > { %s1577_s5 = scalar_lea.hbm %s1724_s19, %s671_s12  ;;  %s1033_s2 = scalar_lea.vmem %s1032_s0, 4096 }
 0x1b3   : > { %p1030_p11 = pneg %p1029_p8  ;;  %p1035_p5 = scmp.lt.s32.totalorder %s1033_s2, %s1027_s1 }
 0x1b5   : > { %p1036_p3 = por %p1035_p5, %p1034_p10 }
 0x1b7   : > { %p1037_p4 = pnand %p1036_p3, %p1030_p11 }
 0x1b9   : > { %1040 = shalt.err (!%p1037_p4)
}
 0x1ba   : > { %s1041_s6 = scalar_lea.hbm %s1577_s5, 2048  ;;  %s1045_s12 = scalar_lea.hbm %s1725_s29, 18432 }
 0x1bb   : > { %p1042_p7 = scmp.ne.s32.totalorder %s1577_s5, %s1041_s6  ;;  %p1046_p6 = scmp.lt.u32.totalorder %s1577_s5, %s1725_s29 }
 0x1bc   : > { %p1047_p2 = scmp.lt.u32.totalorder %s1045_s12, %s1041_s6  ;;  %p1049_p0 = scmp.lt.u32.totalorder %s1041_s6, %s1577_s5 }
 0x1bd   : > { %p1043_p9 = pnand %p1042_p7, %p1726_p1 }
 0x1be   : > { %p1048_p13 = por %p1047_p2, %p1046_p6 }
 0x1bf   : > { %p1044_p12 = pneg %p1043_p9 }
 0x1c0   : > { %p1050_p8 = por %p1049_p0, %p1048_p13 }
 0x1c2   : > { %p1051_p11 = pnand %p1050_p8, %p1044_p12 }
 0x1c4   : > { %1054 = shalt.err (!%p1051_p11)
}
 0x1c5   : > { %s1202_s1 = smov 128   ;;  %s1203_s19 = smov 384  }
 0x1c6   : > { %s1204_s27 = smov 8  }
 0x1c7   : > { %817 = dma.vmem_to_hbm [thread:$0]  (%p1726_p1), %s1572_s20, 2048, %s1577_s5, %s1581_s28, %s1202_s1, %s1203_s19, %s1204_s27  }
 0x1c8 PF: > { %p831_p10 = scmp.ge.s32.totalorder %s1193_s24, 2  ;;  %s546_s0 = sand.u32 1, %s1133_s9  }
 0x1c9   : > { %p1727_p5 = scmp.ne.s32.totalorder %s1709_s18, 0  ;;  %s547_s2 = scalar_lea.sflag [#allocation5], %s546_s0 }
 0x1cb   : > { %p827_p3 = pnand %p831_p10, %p1727_p5 }
 0x1cd   : > { %1128 = dma.done.wait (!%p827_p3), %s547_s2, 2048  }
 0x1ce   : > { %1130 = vsyncadd (!%p827_p3), %s547_s2, 4294965248  ;;  %s21_s24 = sadd.s32 1, %s1193_s24   ;;  %s1729_s8 = sld [smem:[#allocation15_spill]] }
 0x1cf   : > { %p1610_p4 = scmp.ge.s32.totalorder %s21_s24, 29   ;;  %s1730_s5 = sld [smem:[#allocation17_spill]] }
 0x1d0   : > { %s1731_s28 = sld [smem:[#allocation19_spill]]  ;;  %s1732_s9 = smov %s1137_s10 }
 0x1d1   : > { %s1733_s10 = smov %s1141_s11  ;;  %s1734_s11 = smov %s1444_s3 }
 0x1d2   : > { %s1735_s12 = smov %s1149_s13  ;;  %s1736_s13 = smov %s1153_s14 }
 0x1d3   : > { %s1737_s14 = smov %s1430_s15  ;;  %s1738_s15 = smov %s1161_s16 }
 0x1d4   : > { %s1739_s16 = smov %s1165_s17  ;;  %s1740_s17 = smov %s1441_s25 }
 0x1d5   : > { %s1741_s18 = smov %s1181_s21  ;;  %s1742_s19 = smov %s1185_s22 }
 0x1d6   : > { %s1743_s20 = smov %s1189_s23  ;;  %s1744_s21 = smov %s1729_s8 }
 0x1d7   : > { %s1745_s22 = smov %s1730_s5  ;;  %s1746_s23 = smov %s1731_s28 }
 0x1d8   :  { %20 = sbr.rel (!%p1610_p4) target bundleno = 17 (0x11), region = 94 }
 0x1df   :  { %552 = vsyncpa [#allocation4], 1 }
 0x1e0   :  { %554 = vsyncpa [#allocation4 + $0x1], 1 }
 0x1e1   :  { %555 = vsyncpa [#allocation7], 1 }
 0x1e2   :  { %557 = vsyncpa [#allocation7 + $0x1], 1 }
 0x1e3   :  { %558 = vsyncpa [#allocation5], 1 }
 0x1e4   :  { %560 = vsyncpa [#allocation5 + $0x1], 1 }

</bundles_post_ra>
